<compile_context>
chip_gen: v7x
topology: tpu7x:2x2x1
jax: 0.10.0
libtpu: 0.0.40
codegen_flags: <defaults>
</compile_context>

<pallas_src>
import jax
import jax.numpy as jnp
from jax.experimental import pallas as pl
from jax.experimental.pallas import tpu as pltpu

_LANE = 128
_SUBLANE = 8
_NEG_BIG = -1e30  # bias for padded (fake) classes -> exp underflows to 0


def _round_up(x, m):
    return ((x + m - 1) // m) * m


def _decoder_head_kernel(x_ref, w_ref, b_ref, o_ref):
    """Fused linear + bias + row softmax for one M-tile.

    x_ref: (tm, K)   bf16 activation tile (streamed per grid step)
    w_ref: (K, Cp)   bf16 weight, VMEM-resident across grid steps
    b_ref: (1, Cp)   f32 bias (padded classes hold -1e30)
    o_ref: (tm, Cp)  softmax probabilities (padded columns == 0)
    """
    # MXU matmul with f32 accumulation.
    logits = jnp.dot(x_ref[...], w_ref[...], preferred_element_type=jnp.float32)
    logits = logits + b_ref[...]  # broadcast (1, Cp) over rows

    # Numerically stable row softmax (all f32).  Exact divide: one per-row op,
    # negligible cost, and rows sum to 1 to f32 precision.
    m = jnp.max(logits, axis=-1, keepdims=True)
    e = jnp.exp(logits - m)
    denom = jnp.sum(e, axis=-1, keepdims=True)
    o_ref[...] = (e / denom).astype(o_ref.dtype)


def decoder_layer_forward(x, weight, bias, *, tile_m=512,
                          compute_dtype=jnp.bfloat16, out_dtype=None,
                          min_rows_for_pallas=0):
    """x: (B, S, n_block); weight: (num_class, n_block); bias: (num_class,).

    Returns softmax probabilities of shape (B, S, num_class).
    Set min_rows_for_pallas (e.g. 4096) to let XLA handle tiny problems where
    kernel launch + DMA overhead dominates.
    """
    B, S, n_block = x.shape
    num_class = weight.shape[0]
    M = B * S
    out_dtype = out_dtype or x.dtype

    if M < min_rows_for_pallas:
        # Tiny-M fallback: einsum+softmax fused by XLA (no kernel overhead).
        logits = jnp.einsum(
            "bsn,cn->bsc", x.astype(compute_dtype), weight.astype(compute_dtype),
            preferred_element_type=jnp.float32) + bias.astype(jnp.float32)
        return jax.nn.softmax(logits, axis=-1).astype(out_dtype)

    # Lane-dense class dimension: pad to a multiple of 128.
    c_pad = _round_up(num_class, _LANE)
    # Row tile: multiple of 8 sublanes, capped at tile_m, no larger than needed.
    tm = min(_round_up(tile_m, _SUBLANE), _round_up(M, _SUBLANE))
    m_pad = _round_up(M, tm)

    x2d = x.reshape(M, n_block)
    if m_pad != M:
        x2d = jnp.pad(x2d, ((0, m_pad - M), (0, 0)))
    x2d = x2d.astype(compute_dtype)

    # Weight transposed to (K, C), zero-padded classes; bias padded with -1e30
    # so padded columns vanish from the softmax denominator.
    w_t = jnp.zeros((n_block, c_pad), compute_dtype)
    w_t = w_t.at[:, :num_class].set(weight.T.astype(compute_dtype))
    b2d = jnp.full((1, c_pad), _NEG_BIG, dtype=jnp.float32)
    b2d = b2d.at[0, :num_class].set(bias.astype(jnp.float32))

    grid = (m_pad // tm,)
    out_padded = pl.pallas_call(
        _decoder_head_kernel,
        out_shape=jax.ShapeDtypeStruct((m_pad, c_pad), out_dtype),
        grid_spec=pltpu.PrefetchScalarGridSpec(
            num_scalar_prefetch=0,
            grid=grid,
            in_specs=[
                pl.BlockSpec((tm, n_block), lambda i: (i, 0)),     # streamed x tile
                pl.BlockSpec((n_block, c_pad), lambda i: (0, 0)),  # resident W
                pl.BlockSpec((1, c_pad), lambda i: (0, 0)),        # resident b
            ],
            out_specs=pl.BlockSpec((tm, c_pad), lambda i: (i, 0)),
        ),
        compiler_params=pltpu.CompilerParams(
            # Independent M tiles -> shard across TensorCores on v7x megacore.
            dimension_semantics=("parallel",),
        ),
    )(x2d, w_t, b2d)

    return out_padded[:M, :num_class].reshape(B, S, num_class)


def reference_forward(x, weight, bias, compute_dtype=jnp.float32):
    """Pure-JAX reference matching PyTorch Linear + softmax(dim=-1)."""
    logits = jnp.einsum(
        "bsn,cn->bsc", x.astype(compute_dtype), weight.astype(compute_dtype),
        preferred_element_type=jnp.float32) + bias.astype(jnp.float32)
    return jax.nn.softmax(logits, axis=-1)


if __name__ == "__main__":
    # Module hyper-parameters (synthetic, deterministic).
    n_block = 32       # input feature dim of the FinalSoftmax head
    num_class = 10
    dropout = 0.1
    # TODO(synk): FinalSoftmax's dropout is training-only; this forward is eval mode (identity).

    B, S = 2, 8

    key = jax.random.PRNGKey(0)
    kx, kw, kb = jax.random.split(key, 3)

    x = jax.random.normal(kx, (B, S, n_block), dtype=jnp.float32)
    # PyTorch-style Linear init range.
    bound = 1.0 / (n_block ** 0.5)
    weight = jax.random.uniform(kw, (num_class, n_block), jnp.float32, -bound, bound)
    bias = jax.random.uniform(kb, (num_class,), jnp.float32, -bound, bound)

    # min_rows_for_pallas=0 forces the Pallas path even at these toy shapes.
    out = decoder_layer_forward(x, weight, bias, min_rows_for_pallas=0)
    out = jax.block_until_ready(out)

    # Reference with the same bf16 operand cast / f32 accumulation as the kernel,
    # plus a looser check against the full-f32 reference.
    ref_bf16 = reference_forward(x, weight, bias, compute_dtype=jnp.bfloat16)
    ref_f32 = reference_forward(x, weight, bias, compute_dtype=jnp.float32)

    assert out.shape == (B, S, num_class)
    assert jnp.allclose(out, ref_bf16, atol=2e-3, rtol=2e-3), "mismatch vs bf16-compute reference"
    assert jnp.allclose(out, ref_f32, atol=2e-2, rtol=2e-2), "mismatch vs f32 reference"
    # Softmax rows sum to 1 (exact normalization -> tight tolerance holds).
    assert jnp.allclose(jnp.sum(out, axis=-1), 1.0, atol=1e-3)

    print("KERNEL_OK")
</pallas_src>

<mosaic_0001>
module attributes {stable_mosaic.version = 11 : i64} {
  func.func @_decoder_head_kernel(%arg0: i32, %arg1: memref<16x32xbf16, #tpu.memory_space<vmem>>, %arg2: memref<32x128xbf16, #tpu.memory_space<vmem>>, %arg3: memref<1x128xf32, #tpu.memory_space<vmem>>, %arg4: memref<16x128xf32, #tpu.memory_space<vmem>>) attributes {dimension_semantics = [#tpu.dimension_semantics<parallel>], iteration_bounds = array<i64: 1>, scalar_prefetch = 0 : i64, scratch_operands = 0 : i64, tpu.core_type = #tpu.core_type<tc>, window_params = [{transform_indices = @transform_0, window_bounds = array<i64: 16, 32>}, {pipeline_mode = #tpu.pipeline_mode<synchronous>, transform_indices = @transform_1, window_bounds = array<i64: 32, 128>}, {pipeline_mode = #tpu.pipeline_mode<synchronous>, transform_indices = @transform_2, window_bounds = array<i64: 1, 128>}, {transform_indices = @transform_3, window_bounds = array<i64: 16, 128>}]} {
    %c0 = arith.constant 0 : index
    %c0_0 = arith.constant 0 : index
    %0 = vector.load %arg1[%c0, %c0_0] : memref<16x32xbf16, #tpu.memory_space<vmem>>, vector<16x32xbf16>
    %c0_1 = arith.constant 0 : index
    %c0_2 = arith.constant 0 : index
    %1 = vector.load %arg2[%c0_1, %c0_2] : memref<32x128xbf16, #tpu.memory_space<vmem>>, vector<32x128xbf16>
    %cst = arith.constant dense<0.000000e+00> : vector<16x128xf32>
    %2 = tpu.matmul %0, %1, %cst {dimension_numbers = #tpu.dot_dimension_numbers<[1], [0], [0], [1], [0, 0, 1, 1], [], []>} : vector<16x32xbf16>, vector<32x128xbf16>, vector<16x128xf32> -> vector<16x128xf32>
    %c0_3 = arith.constant 0 : index
    %c0_4 = arith.constant 0 : index
    %3 = vector.load %arg3[%c0_3, %c0_4] : memref<1x128xf32, #tpu.memory_space<vmem>>, vector<1x128xf32>
    %4 = vector.broadcast %3 : vector<1x128xf32> to vector<16x128xf32>
    %5 = arith.addf %2, %4 : vector<16x128xf32>
    %cst_5 = arith.constant dense<0xFF800000> : vector<16xf32>
    %6 = vector.multi_reduction <maximumf>, %5, %cst_5 [1] : vector<16x128xf32> to vector<16xf32>
    %7 = vector.shape_cast %6 : vector<16xf32> to vector<16x1xf32>
    %8 = vector.broadcast %7 : vector<16x1xf32> to vector<16x128xf32>
    %9 = arith.subf %5, %8 : vector<16x128xf32>
    %10 = math.exp %9 : vector<16x128xf32>
    %cst_6 = arith.constant dense<0.000000e+00> : vector<16xf32>
    %11 = vector.multi_reduction <add>, %10, %cst_6 [1] : vector<16x128xf32> to vector<16xf32>
    %12 = vector.shape_cast %11 : vector<16xf32> to vector<16x1xf32>
    %13 = vector.broadcast %12 : vector<16x1xf32> to vector<16x128xf32>
    %14 = arith.divf %10, %13 : vector<16x128xf32>
    %c0_7 = arith.constant 0 : index
    %c0_8 = arith.constant 0 : index
    %15 = vector.load %arg4[%c0_7, %c0_8] : memref<16x128xf32, #tpu.memory_space<vmem>>, vector<16x128xf32>
    tpu.vector_store %arg4[%c0_7, %c0_8], %14 {strides = array<i32>} : memref<16x128xf32, #tpu.memory_space<vmem>>, vector<16x128xf32>,
    return
  }
  func.func @transform_0(%arg0: i32) -> (i32, i32) {
    %c0_i32 = arith.constant 0 : i32
    %c0_i32_0 = arith.constant 0 : i32
    return %arg0, %c0_i32 : i32, i32
  }
  func.func @transform_1(%arg0: i32) -> (i32, i32) {
    %c0_i32 = arith.constant 0 : i32
    %c0_i32_0 = arith.constant 0 : i32
    %c0_i32_1 = arith.constant 0 : i32
    return %c0_i32, %c0_i32_0 : i32, i32
  }
  func.func @transform_2(%arg0: i32) -> (i32, i32) {
    %c0_i32 = arith.constant 0 : i32
    %c0_i32_0 = arith.constant 0 : i32
    %c0_i32_1 = arith.constant 0 : i32
    return %c0_i32, %c0_i32_0 : i32, i32
  }
  func.func @transform_3(%arg0: i32) -> (i32, i32) {
    %c0_i32 = arith.constant 0 : i32
    %c0_i32_0 = arith.constant 0 : i32
    return %arg0, %c0_i32 : i32, i32
  }
}

</mosaic_0001>

<bundles_post_ra>
// kernel: tpu_custom_call.1
= control target key start
LH: loop header
LB: loop body
LE: loop exit
PB: predicated region body
PF: predicated region fallthrough
CT: control target
= control target key end

     0   :  { %8 = vsyncpa [#allocation3], 0  ;;  %s333_s0 = inlined_call_operand.hbm [shape: bf16[16,32], index: 0, kind: input, shape index: {}]   ;;  %s334_s1 = inlined_call_operand.hbm [shape: bf16[32,128], index: 1, kind: input, shape index: {}]   ;;  %s335_s2 = inlined_call_operand.vmem [shape: f32[1,128], index: 2, kind: input, shape index: {}]   ;;  %s336_s3 = inlined_call_operand.hbm [shape: f32[16,128], index: 3, kind: output, shape index: {}]  }
   0x1   :  { %9 = vsyncpa [#allocation6], 0 }
   0x2   :  { %10 = vsyncpa [#allocation4], 0  ;;  %s265_s12 = smov [#allocation2]   ;;  %s193_s16 = scalar_lea.hbm %s333_s0, 128 }
   0x3   :  { %s16_s13 = sshll.u32 %s265_s12, 4  ;;  %p194_p0 = scmp.ne.s32.totalorder %s333_s0, %s193_s16  ;;  %s17_s13 = int_to_ptr.vmem [resolvable:$true] %s16_s13 }
   0x4   :  { %p197_p1 = scmp.lt.u32.totalorder %s193_s16, %s333_s0 }
   0x6   :  { %p199_p2 = pnand %p197_p1, %p194_p0 }
   0x8   :  { %202 = shalt.err (!%p199_p2)
}
   0x9   :  { %s203_s21 = scalar_lea.vmem %s17_s13, 128  ;;  %p208_p4 = scmp.lt.s32.totalorder %s17_s13, %s17_s13 }
   0xa   :  { %p204_p3 = scmp.ne.s32.totalorder %s17_s13, %s203_s21  ;;  %p209_p5 = scmp.lt.s32.totalorder %s203_s21, %s203_s21 }
   0xc   :  { %p210_p6 = por %p209_p5, %p208_p4 }
   0xe   :  { %p211_p7 = pnand %p210_p6, %p204_p3 }
  0x10   :  { %214 = shalt.err (!%p211_p7)
}
  0x11   :  { %s266_s22 = smov 64   ;;  %s267_s23 = smov 4  }
  0x12   :  { %22 = dma.hbm_to_vmem [thread:$0]  %s333_s0, 128, %s17_s13, [#allocation3], %s266_s22, %s266_s22, %s267_s23  }
  0x13   :  { %s268_s26 = smov [#allocation5]   ;;  %s215_s30 = scalar_lea.hbm %s334_s1, 256 }
  0x14   :  { %s28_s27 = sshll.u32 %s268_s26, 4  ;;  %p216_p8 = scmp.ne.s32.totalorder %s334_s1, %s215_s30  ;;  %s29_s27 = int_to_ptr.vmem [resolvable:$true] %s28_s27 }
  0x15   :  { %p219_p9 = scmp.lt.u32.totalorder %s215_s30, %s334_s1 }
  0x17   :  { %p221_p10 = pnand %p219_p9, %p216_p8 }
  0x19   :  { %224 = shalt.err (!%p221_p10)
}
  0x1a   :  { %s225_s8 = scalar_lea.vmem %s29_s27, 256  ;;  %p230_p12 = scmp.lt.s32.totalorder %s29_s27, %s29_s27 }
  0x1b   :  { %p226_p11 = scmp.ne.s32.totalorder %s29_s27, %s225_s8  ;;  %p231_p13 = scmp.lt.s32.totalorder %s225_s8, %s225_s8 }
  0x1d   :  { %p232_p0 = por %p231_p13, %p230_p12 }
  0x1f   :  { %p233_p1 = pnand %p232_p0, %p226_p11 }
  0x21   :  { %236 = shalt.err (!%p233_p1)
}
  0x22   :  { %34 = dma.hbm_to_vmem [thread:$0]  %s334_s1, 256, %s29_s27, [#allocation6], %s266_s22, %s266_s22, %s267_s23  }
  0x23   :  { %259 = dma.done.wait [#allocation3], 128  }
  0x24   :  { %260 = vsyncadd [#allocation3], 4294967168 }
  0x25   :  { %261 = dma.done.wait [#allocation6], 256  }
  0x26   :  { %262 = vsyncadd [#allocation6], 4294967040  ;;  %v269_v0 = vmov 0.0   ;;  %vm270_vm0 = vmmov 0   ;;  %v182_v1 = vld [vmem:[#allocation5] sm:$0xff]   ;;  %v183_v2 = vld [vmem:[#allocation5 + $0x8] sm:$0xff]  }
  0x27   :  { %165 = vmatprep.subr.bf16.mxu0 %v269_v0  ;;  %169 = vmatprep.mubr.msk.bf16.mxu0 %vm270_vm0, %v269_v0  ;;  %v184_v3 = vld [vmem:[#allocation2] sm:$0xff]   ;;  %vm74_vm1 = vcmask 261120   ;;  %s271_s1 = smov [#allocation7]  }
  0x28   :  { %166 = vmatpush3.bf16.msra.mxu0 %v182_v1  ;;  %v157_v4 = vld [vmem:[%s335_s2] ss:$0 sm:$0xff]  ;;  %s144_s2 = sshll.u32 %s271_s1, 4  ;;  %s145_s2 = int_to_ptr.vmem [resolvable:$true] %s144_s2 }
  0x29   :  { %167 = vmatprep.subr.bf16.mxu0 %v269_v0  ;;  %s237_s12 = scalar_lea.vmem %s145_s2, 256  ;;  %p242_p3 = scmp.lt.s32.totalorder %s145_s2, %s145_s2 }
  0x2a   :  { %p238_p2 = scmp.ne.s32.totalorder %s145_s2, %s237_s12  ;;  %p243_p4 = scmp.lt.s32.totalorder %s237_s12, %s237_s12 }
  0x2c   :  { %168 = vmatpush3.bf16.msra.mxu0 %v183_v2  ;;  %p244_p5 = por %p243_p4, %p242_p3 }
  0x2e   :  { %p245_p6 = pnand %p244_p5, %p238_p2 }
  0x2f   :  { %170 = vmatmul.mubr.msk.bf16.vlgmr.msra.gmra.mrb[0].mxu0 %vm74_vm1, %v184_v3 }
 0x102   :  { %v112_v5 = vpop.f32.mrb[0].mxu0 }
 0x103   :  { %v113_v6 = vadd.f32 %v157_v4, %v112_v5  ;;  %v171_v7 = vpop.f32.mrb[1].mxu0 }
 0x104   :  { %v115_v8 = vpop.f32.mrb[2].mxu0 }
 0x105   :  { %119 = vmax.xlane.f32.xlu0 %v113_v6  ;;  %v172_v9 = vpop.f32.mrb[3].mxu0  ;;  %v116_v10 = vadd.f32 %v157_v4, %v115_v8 }
 0x109   :  { %121 = vmax.xlane.f32.xlu0 %v116_v10 }
 0x192   :  { %v120_v11 = vpop.xlane.xlu0 %119 }
 0x193   :  { %v123_v12 = vsub.f32 %v113_v6, %v120_v11 }
 0x195   :  { %v125_v13 = vmul.f32 1.442695, %v123_v12 }
 0x196   :  { %v122_v14 = vpop.xlane.xlu0 %121 }
 0x197   :  { %185 = vpow2.f32 %v125_v13  ;;  %v124_v15 = vsub.f32 %v116_v10, %v122_v14 }
 0x199   :  { %v127_v16 = vmul.f32 1.442695, %v124_v15 }
 0x19b   :  { %187 = vpow2.f32 %v127_v16 }
 0x1a1   :  { %v186_v17 = vpop.eup %185 }
 0x1a2   :  { %129 = vadd.xlane.f32.xlu1 %v186_v17 }
 0x1a5   :  { %v188_v18 = vpop.eup %187 }
 0x1a6   :  { %131 = vadd.xlane.f32.xlu1 %v188_v18 }
 0x22f   :  { %v130_v19 = vpop.xlane.xlu1 %129 }
 0x230   :  { %189 = vrcp.f32 %v130_v19 }
 0x233   :  { %v132_v20 = vpop.xlane.xlu1 %131 }
 0x234   :  { %191 = vrcp.f32 %v132_v20 }
 0x23a   :  { %v190_v21 = vpop.eup %189 }
 0x23b   :  { %v134_v22 = vmul.f32 %v190_v21, %v186_v17 }
 0x23d   :  { %137 = vst [vmem:[#allocation7] sm:$0xff] %v134_v22 }
 0x23e   :  { %v192_v23 = vpop.eup %191 }
 0x23f   :  { %v136_v24 = vmul.f32 %v192_v23, %v188_v18 }
 0x241   :  { %138 = vst [vmem:[#allocation7 + $0x8] sm:$0xff] %v136_v24 }
 0x242   :  { %248 = shalt.err (!%p245_p6)
}
 0x243   :  { %s249_s15 = scalar_lea.hbm %s336_s3, 256 }
 0x244   :  { %p250_p7 = scmp.ne.s32.totalorder %s336_s3, %s249_s15  ;;  %p253_p8 = scmp.lt.u32.totalorder %s249_s15, %s336_s3 }
 0x246   :  { %p255_p9 = pnand %p253_p8, %p250_p7 }
 0x248   :  { %258 = shalt.err (!%p255_p9)
}
 0x249   :  { %s272_s20 = smov 128   ;;  %s273_s21 = smov 8  }
 0x24a   :  { %150 = dma.vmem_to_hbm [thread:$0]  %s145_s2, 256, %s336_s3, [#allocation4], %s272_s20, %s272_s20, %s273_s21  }
 0x24b   :  { %263 = dma.done.wait [#allocation4], 256  }
 0x24c   :  { %264 = vsyncadd [#allocation4], 4294967040 }
 0x24d   :  { %154 = vsyncpa [#allocation3], 1 }
 0x24e   :  { %155 = vsyncpa [#allocation6], 1 }
 0x24f   :  { %156 = vsyncpa [#allocation4], 1 }

</bundles_post_ra>
